<compile_context>
chip_gen: v6e
topology: v6e:2x2x1
jax: 0.10.0
libtpu: 0.0.40
codegen_flags: <defaults>
</compile_context>

<pallas_src>
import functools

import jax
import jax.numpy as jnp
from jax import lax
from jax.experimental import pallas as pl
from jax.experimental.pallas import tpu as pltpu


_TARGET_BLOCK_BYTES = 2 * 1024 * 1024   # ~2 MiB per input block (double-buffered)
_VMEM_LIMIT_BYTES = 32 * 1024 * 1024    # safe on v5e/v6e (128 MiB) and v7x (64 MiB)


def _round_up(v: int, m: int) -> int:
    return ((v + m - 1) // m) * m


def _round_down(v: int, m: int) -> int:
    return (v // m) * m


def _make_gem_kernel(*, p, eps, hw, n_rows, tile_n, tile_hw, mask_rows, mask_cols):
    p_f = float(p)
    inv_p = 1.0 / p_f
    inv_hw = 1.0 / float(hw)
    p_int = int(round(p_f))
    use_int_pow = abs(p_f - p_int) < 1e-12 and 1 <= p_int <= 64

    def kernel(x_ref, o_ref, acc_ref):
        k = pl.program_id(1)

        @pl.when(k == 0)
        def _():
            acc_ref[...] = jnp.zeros_like(acc_ref)

        # f32 math throughout (accuracy; also required on v5e which lacks a
        # bf16 VALU/EUP).  Block is only ~2 MiB so the f32 temporary is cheap.
        x = x_ref[...].astype(jnp.float32)

        if mask_rows:  # tail rows of a partial row-block: make them benign
            rows = pl.program_id(0) * tile_n + lax.broadcasted_iota(
                jnp.int32, (tile_n, tile_hw), 0)
            x = jnp.where(rows < n_rows, x, 1.0)

        x = jnp.maximum(x, eps)          # clamp(min=eps) -> x > 0

        if use_int_pow:
            # Integer p: exponentiation by squaring on the VPU (no EUP traffic).
            xp = None
            base = x
            e = p_int
            while e > 0:
                if e & 1:
                    xp = base if xp is None else xp * base
                e >>= 1
                if e:
                    base = base * base
        else:
            # Non-integer p: x**p = exp(p*log(x)); may underflow like native pow.
            xp = jnp.exp(p_f * jnp.log(x))

        if mask_cols:  # tail columns of a partial HW-block contribute nothing
            cols = pl.program_id(1) * tile_hw + lax.broadcasted_iota(
                jnp.int32, (tile_n, tile_hw), 1)
            xp = jnp.where(cols < hw, xp, 0.0)

        acc_ref[...] += jnp.sum(xp, axis=-1, keepdims=True)

        @pl.when(k == pl.num_programs(1) - 1)
        def _():
            mean_p = acc_ref[...] * inv_hw                    # (tile_n, 1), > 0
            # Final 1/p root on only tile_n values — exp/log cost is negligible.
            o_ref[...] = jnp.exp(inv_p * jnp.log(mean_p)).astype(o_ref.dtype)

    return kernel


@functools.partial(jax.jit, static_argnames=("p", "eps"))
def gem_pallas(x, p: float = 3.0, eps: float = 1e-6):
    """GeM pooling. x: (B, C, H, W). Returns (B, C, 1, 1) in x.dtype."""
    B, C, H, W = x.shape
    N = B * C
    HW = H * W
    itemsize = jnp.dtype(x.dtype).itemsize

    xf = x.reshape(N, HW)   # free reshape (contiguous), no extra HBM pass

    # ---- HW (reduction) tile: full HW if it fits the byte budget, else a
    # multiple-of-128 chunk (tail columns masked in-kernel). ----
    if 8 * HW * itemsize <= _TARGET_BLOCK_BYTES:
        tile_hw = HW
    else:
        tile_hw = max(128, _round_down(_TARGET_BLOCK_BYTES // (8 * itemsize), 128))

    # ---- Row (parallel) tile: sized by bytes, multiple of 8, and capped so the
    # parallel grid axis keeps >= 2 steps (both v7x TensorCores busy). ----
    max_rows = max(8, _round_down(_TARGET_BLOCK_BYTES // (tile_hw * itemsize), 8))
    if N <= 8:
        tile_n = N                                   # block dim == full dim is legal
    else:
        half_rows = _round_up(pl.cdiv(N, 2), 8)
        tile_n = max(8, min(max_rows, half_rows))

    n_grid = pl.cdiv(N, tile_n)
    hw_grid = pl.cdiv(HW, tile_hw)

    kernel = _make_gem_kernel(
        p=float(p), eps=float(eps), hw=HW, n_rows=N,
        tile_n=tile_n, tile_hw=tile_hw,
        mask_rows=(N % tile_n != 0), mask_cols=(HW % tile_hw != 0))

    out = pl.pallas_call(
        kernel,
        out_shape=jax.ShapeDtypeStruct((N, 1), x.dtype),
        grid=(n_grid, hw_grid),
        in_specs=[pl.BlockSpec((tile_n, tile_hw), lambda i, k: (i, k))],
        out_specs=pl.BlockSpec((tile_n, 1), lambda i, k: (i, 0)),
        scratch_shapes=[pltpu.VMEM((tile_n, 1), jnp.float32)],
        compiler_params=pltpu.CompilerParams(
            dimension_semantics=("parallel", "arbitrary"),
            vmem_limit_bytes=_VMEM_LIMIT_BYTES,
        ),
    )(xf)

    # TODO(synk): p_trainable=True (p as a learned scalar) would need p passed
    # as a runtime scalar (SMEM) instead of being baked in at trace time.
    return out.reshape(B, C, 1, 1)


def _gem_ref(x, p, eps):
    xc = jnp.clip(x.astype(jnp.float32), eps, None)
    return jnp.mean(xc ** p, axis=(2, 3), keepdims=True) ** (1.0 / p)


if __name__ == "__main__":
    key = jax.random.PRNGKey(0)
    p, eps = 3.0, 1e-6

    # Primary case: matches the module's expected input layout.
    B, C, H, W = 2, 4, 16, 16
    x = jax.random.normal(key, (B, C, H, W), dtype=jnp.float32)
    y = gem_pallas(x, p=p, eps=eps)
    jax.block_until_ready(y)
    assert y.shape == (B, C, 1, 1)
    ref = _gem_ref(x, p, eps)
    assert jnp.allclose(y.astype(jnp.float32), ref, rtol=1e-4, atol=1e-5)

    # Secondary case: N = B*C not a multiple of the row tile -> exercises the
    # partial-block path with in-kernel tail-row masking (no jnp.pad copy).
    B2, C2, H2, W2 = 3, 5, 7, 7
    x2 = jax.random.normal(jax.random.PRNGKey(1), (B2, C2, H2, W2), jnp.float32)
    y2 = gem_pallas(x2, p=p, eps=eps)
    jax.block_until_ready(y2)
    ref2 = _gem_ref(x2, p, eps)
    assert jnp.allclose(y2.astype(jnp.float32), ref2, rtol=1e-4, atol=1e-5)

    print("KERNEL_OK")
</pallas_src>

<mosaic_0001>
module attributes {stable_mosaic.version = 11 : i64} {
  func.func @kernel(%arg0: i32, %arg1: i32, %arg2: memref<8x256xf32, #tpu.memory_space<vmem>>, %arg3: memref<8x1xf32, #tpu.memory_space<vmem>>, %arg4: memref<8x1xf32, #tpu.memory_space<vmem>>) attributes {dimension_semantics = [#tpu.dimension_semantics<parallel>, #tpu.dimension_semantics<arbitrary>], iteration_bounds = array<i64: 1, 1>, scalar_prefetch = 0 : i64, scratch_operands = 1 : i64, tpu.core_type = #tpu.core_type<tc>, window_params = [{transform_indices = @transform_0, window_bounds = array<i64: 8, 256>}, {transform_indices = @transform_1, window_bounds = array<i64: 8, 1>}]} {
    %c0_i32 = arith.constant 0 : i32
    %0 = arith.cmpi eq, %arg1, %c0_i32 : i32
    %1 = arith.extui %0 : i1 to i32
    %c0_i32_0 = arith.constant 0 : i32
    %2 = arith.cmpi ne, %1, %c0_i32_0 : i32
    scf.if %2 {
      %cst_9 = arith.constant 0.000000e+00 : f32
      %16 = vector.broadcast %cst_9 : f32 to vector<8x1xf32>
      %c0_10 = arith.constant 0 : index
      %c0_11 = arith.constant 0 : index
      %17 = vector.load %arg4[%c0_10, %c0_11] : memref<8x1xf32, #tpu.memory_space<vmem>>, vector<8x1xf32>
      tpu.vector_store %arg4[%c0_10, %c0_11], %16 {strides = array<i32>} : memref<8x1xf32, #tpu.memory_space<vmem>>, vector<8x1xf32>,
    } else {
    }
    %c0 = arith.constant 0 : index
    %c0_1 = arith.constant 0 : index
    %3 = vector.load %arg2[%c0, %c0_1] : memref<8x256xf32, #tpu.memory_space<vmem>>, vector<8x256xf32>
    %cst = arith.constant 9.99999997E-7 : f32
    %4 = vector.broadcast %cst : f32 to vector<8x256xf32>
    %5 = arith.maximumf %3, %4 : vector<8x256xf32>
    %6 = arith.mulf %5, %5 : vector<8x256xf32>
    %7 = arith.mulf %5, %6 : vector<8x256xf32>
    %c0_2 = arith.constant 0 : index
    %c0_3 = arith.constant 0 : index
    %8 = vector.load %arg4[%c0_2, %c0_3] : memref<8x1xf32, #tpu.memory_space<vmem>>, vector<8x1xf32>
    %cst_4 = arith.constant dense<0.000000e+00> : vector<8xf32>
    %9 = vector.multi_reduction <add>, %7, %cst_4 [1] : vector<8x256xf32> to vector<8xf32>
    %10 = vector.shape_cast %9 : vector<8xf32> to vector<8x1xf32>
    %11 = arith.addf %8, %10 : vector<8x1xf32>
    %c0_5 = arith.constant 0 : index
    %c0_6 = arith.constant 0 : index
    %12 = vector.load %arg4[%c0_5, %c0_6] : memref<8x1xf32, #tpu.memory_space<vmem>>, vector<8x1xf32>
    tpu.vector_store %arg4[%c0_5, %c0_6], %11 {strides = array<i32>} : memref<8x1xf32, #tpu.memory_space<vmem>>, vector<8x1xf32>,
    %c0_i32_7 = arith.constant 0 : i32
    %13 = arith.cmpi eq, %arg1, %c0_i32_7 : i32
    %14 = arith.extui %13 : i1 to i32
    %c0_i32_8 = arith.constant 0 : i32
    %15 = arith.cmpi ne, %14, %c0_i32_8 : i32
    scf.if %15 {
      %c0_9 = arith.constant 0 : index
      %c0_10 = arith.constant 0 : index
      %16 = vector.load %arg4[%c0_9, %c0_10] : memref<8x1xf32, #tpu.memory_space<vmem>>, vector<8x1xf32>
      %cst_11 = arith.constant 3.906250e-03 : f32
      %17 = vector.broadcast %cst_11 : f32 to vector<8x1xf32>
      %18 = arith.mulf %16, %17 : vector<8x1xf32>
      %19 = math.log %18 : vector<8x1xf32>
      %cst_12 = arith.constant 0.333333343 : f32
      %20 = vector.broadcast %cst_12 : f32 to vector<8x1xf32>
      %21 = arith.mulf %20, %19 : vector<8x1xf32>
      %22 = math.exp %21 : vector<8x1xf32>
      %c0_13 = arith.constant 0 : index
      %c0_14 = arith.constant 0 : index
      %23 = vector.load %arg3[%c0_13, %c0_14] : memref<8x1xf32, #tpu.memory_space<vmem>>, vector<8x1xf32>
      tpu.vector_store %arg3[%c0_13, %c0_14], %22 {strides = array<i32>} : memref<8x1xf32, #tpu.memory_space<vmem>>, vector<8x1xf32>,
    } else {
    }
    return
  }
  func.func @transform_0(%arg0: i32, %arg1: i32) -> (i32, i32) {
    %c0_i32 = arith.constant 0 : i32
    return %arg0, %arg1 : i32, i32
  }
  func.func @transform_1(%arg0: i32, %arg1: i32) -> (i32, i32) {
    %c0_i32 = arith.constant 0 : i32
    %c0_i32_0 = arith.constant 0 : i32
    return %arg0, %c0_i32 : i32, i32
  }
}

</mosaic_0001>

<bundles_post_ra>
// kernel: gem_pallas.1
= control target key start
LH: loop header
LB: loop body
LE: loop exit
PB: predicated region body
PF: predicated region fallthrough
CT: control target
= control target key end

     0   :  { %vm12_vm0 = vcmask 7168   ;;  %v49_v2 = vmov 0.0   ;;  %s72_s0 = inlined_call_operand.vmem [shape: f32[8,256], index: 0, kind: input, shape index: {}]   ;;  %s73_s1 = inlined_call_operand.vmem [shape: f32[8,1], index: 1, kind: output, shape index: {}]  }
   0x1   :  { %v14_v0 = vld [vmem:[%s72_s0] sm:$0xff]  ;;  %v15_v1 = vld [vmem:[%s72_s0 + $0x8] sm:$0xff]  ;;  %13 = vst.msk [vmem:[#allocation2] sm:$0xff] %vm12_vm0, %v49_v2 }
   0x2   :  { %v16_v3 = vmax.f32 %v14_v0, 1e-06  ;;  %v17_v4 = vmax.f32 %v15_v1, 1e-06 }
   0x4   :  { %v18_v5 = vmul.f32 %v16_v3, %v16_v3  ;;  %v19_v6 = vmul.f32 %v17_v4, %v17_v4 }
   0x6   :  { %v20_v7 = vmul.f32 %v18_v5, %v16_v3  ;;  %v21_v8 = vmul.f32 %v19_v6, %v17_v4 }
   0x8   :  { %v23_v9 = vadd.f32 %v21_v8, %v20_v7  ;;  %v22_v10 = vld [vmem:[#allocation2] sm:$0xff] }
   0xa   :  { %24 = vadd.xlane.f32.xlu0 %v23_v9 }
  0x93   :  { %v25_v11 = vpop.xlane.xlu0 %24 }
  0x94   :  { %v26_v12 = vadd.f32 %v25_v11, %v22_v10 }
  0x96   :  { %28 = vst.msk [vmem:[#allocation2] sm:$0xff] %vm12_vm0, %v26_v12 }
  0x9d   :  { %v32_v13 = vld [vmem:[#allocation2] sm:$0xff] }
  0x9e   :  { %v33_v14 = vmul.f32 0.00390625, %v32_v13 }
  0xa0   :  { %45 = vlog2.f32 %v33_v14 }
  0xad   :  { %v46_v15 = vpop.eup %45 }
  0xae   :  { %v35_v16 = vmul.f32 0.6931472, %v46_v15 }
  0xb0   :  { %v36_v17 = vmul.f32 0.33333334, %v35_v16 }
  0xb2   :  { %v37_v18 = vmul.f32 1.442695, %v36_v17 }
  0xb4   :  { %47 = vpow2.f32 %v37_v18 }
  0xc1   :  { %v48_v19 = vpop.eup %47 }
  0xc2   :  { %39 = vst.msk [vmem:[%s73_s1] sm:$0xff] %vm12_vm0, %v48_v19 }

</bundles_post_ra>
